<compile_context>
chip_gen: v6e
topology: v6e:2x2x1
jax: 0.10.0
libtpu: 0.0.40
codegen_flags: <defaults>
</compile_context>

<pallas_src>
import functools

import jax
import jax.numpy as jnp
from jax.experimental import pallas as pl
from jax.experimental.pallas import tpu as pltpu


def _round_up(n, m):
    return ((n + m - 1) // m) * m


# -----------------------------------------------------------------------------
# Parameter prep (cheap; call once and cache in real use)
# -----------------------------------------------------------------------------
def prepare_proj_params(weight, bias):
    """Conv weight (E, C, ph, pw) -> (K, E) bf16 matmul operand; bias -> (1, E) f32."""
    E = weight.shape[0]
    K = weight.shape[1] * weight.shape[2] * weight.shape[3]
    w_mat = weight.reshape(E, K).T.astype(jnp.bfloat16)   # K order = (c, kh, kw)
    b_mat = bias.reshape(1, E).astype(jnp.float32)
    return w_mat, b_mat


# -----------------------------------------------------------------------------
# Primary path: in-kernel patch extraction (one HBM pass over x)
# -----------------------------------------------------------------------------
def _fused_kernel(x_ref, w_ref, b_ref, o_ref, *, gh, ph, gw, pw):
    # x_ref: (ib, C, H, W) f32 raw images     (streaming)
    # w_ref: (K, E)        bf16 projection    (resident: constant index_map)
    # b_ref: (1, E)        f32 bias           (resident)
    # o_ref: (ib, N, E)    output block
    ib, C, H, W = x_ref.shape
    N = gh * gw
    K = C * ph * pw
    for n in range(ib):  # small static unroll (ib <= 8)
        xb = x_ref[n]                                        # (C, H, W) f32
        # Non-overlapping patch relayout in VMEM (f32 for robust lowering, then bf16).
        p = xb.reshape(C, gh, ph, gw, pw)
        p = jnp.transpose(p, (1, 3, 0, 2, 4))                # (gh, gw, C, ph, pw)
        p = p.reshape(N, K).astype(jnp.bfloat16)
        acc = jnp.dot(p, w_ref[...], preferred_element_type=jnp.float32)
        o_ref[n] = (acc + b_ref[...]).astype(o_ref.dtype)


def _patch_embed_fused(x, w_mat, b_mat, patch_size, out_dtype):
    B, C, H, W = x.shape
    ph, pw = patch_size
    gh, gw = H // ph, W // pw
    N = gh * gw
    K = C * ph * pw
    E = w_mat.shape[1]

    # Images per grid step: big enough to amortize per-step overhead (~4 MiB of
    # HBM traffic per step), small enough that the grid keeps >= 2 steps so both
    # v7x TensorCores get work; hard cap on the static unroll.
    img_bytes = C * H * W * x.dtype.itemsize + N * E * jnp.dtype(out_dtype).itemsize
    ib = min(max(1, B // 2), max(1, (4 * 1024 * 1024) // max(1, img_bytes)), 8)
    grid = pl.cdiv(B, ib)

    kernel = functools.partial(_fused_kernel, gh=gh, ph=ph, gw=gw, pw=pw)
    return pl.pallas_call(
        kernel,
        out_shape=jax.ShapeDtypeStruct((B, N, E), out_dtype),
        grid_spec=pl.GridSpec(
            grid=(grid,),
            in_specs=[
                # Raw NCHW image block; last two dims are full-extent (H, W).
                pl.BlockSpec((ib, C, H, W), lambda i: (i, 0, 0, 0)),
                # Weight / bias: constant block index -> stay resident in VMEM.
                pl.BlockSpec((K, E), lambda i: (0, 0)),
                pl.BlockSpec((1, E), lambda i: (0, 0)),
            ],
            out_specs=pl.BlockSpec((ib, N, E), lambda i: (i, 0, 0)),
        ),
        compiler_params=pltpu.CompilerParams(
            dimension_semantics=("parallel",),
            vmem_limit_bytes=48 * 1024 * 1024,
        ),
    )(x, w_mat, b_mat)


# -----------------------------------------------------------------------------
# Fallback path: host-side (XLA-fused) im2col + row-tiled matmul kernel
# -----------------------------------------------------------------------------
def _split_kernel(p_ref, w_ref, b_ref, o_ref):
    acc = jnp.dot(p_ref[...], w_ref[...], preferred_element_type=jnp.float32)
    o_ref[...] = (acc + b_ref[...]).astype(o_ref.dtype)


def _patch_embed_split(x, w_mat, b_mat, patch_size, out_dtype, *, row_tile=1024):
    B, C, H, W = x.shape
    ph, pw = patch_size
    gh, gw = H // ph, W // pw
    N = gh * gw
    K = C * ph * pw
    E = w_mat.shape[1]
    M = B * N

    # Host-side patch extraction in bf16 (cast + transpose fused by XLA into one pass).
    patches = x.astype(jnp.bfloat16).reshape(B, C, gh, ph, gw, pw)
    patches = jnp.transpose(patches, (0, 2, 4, 1, 3, 5)).reshape(M, K)

    # Large row tile (multiple of 8), but keep >= 2 grid steps for the two v7x TCs;
    # partial last block is handled by the grid (no M padding, no output slice).
    tm = min(M, max(8, min(row_tile, _round_up(pl.cdiv(M, 2), 8))))
    grid = pl.cdiv(M, tm)

    out = pl.pallas_call(
        _split_kernel,
        out_shape=jax.ShapeDtypeStruct((M, E), out_dtype),
        grid_spec=pl.GridSpec(
            grid=(grid,),
            in_specs=[
                pl.BlockSpec((tm, K), lambda i: (i, 0)),
                pl.BlockSpec((K, E), lambda i: (0, 0)),   # resident
                pl.BlockSpec((1, E), lambda i: (0, 0)),   # resident
            ],
            out_specs=pl.BlockSpec((tm, E), lambda i: (i, 0)),
        ),
        compiler_params=pltpu.CompilerParams(
            dimension_semantics=("parallel",),
            vmem_limit_bytes=48 * 1024 * 1024,
        ),
    )(patches, w_mat, b_mat)
    return out.reshape(B, N, E)


# -----------------------------------------------------------------------------
# Public forward
# -----------------------------------------------------------------------------
_FUSED_OK = None  # one-time probe result; production code should pin the path at init


def patch_embed_forward(x, weight, bias, patch_size, *, out_dtype=jnp.bfloat16):
    """PatchEmbed.forward: x (B, C, H, W) -> (B, num_patches, E).

    out_dtype defaults to bf16 (accumulation + bias in f32); pass jnp.float32 for
    exact-dtype parity with the PyTorch module if a numerically sensitive consumer
    requires it.
    """
    global _FUSED_OK
    w_mat, b_mat = prepare_proj_params(weight, bias)
    if _FUSED_OK is not False:
        try:
            out = _patch_embed_fused(x, w_mat, b_mat, patch_size, out_dtype)
            if _FUSED_OK is None:
                # Eager call => Mosaic lowering happens here; probe it once.
                out.block_until_ready()
                _FUSED_OK = True
            return out
        except Exception:
            _FUSED_OK = False
    # TODO(synk): drop this fallback once the in-kernel (C,gh,ph,gw,pw)->(gh,gw,C,ph,pw)
    # relayout lowers robustly in Mosaic for small / non-(8,128)-aligned patch dims.
    return _patch_embed_split(x, w_mat, b_mat, patch_size, out_dtype)


if __name__ == "__main__":
    # Small shapes consistent with the module: img_size=16, patch_size=4,
    # in_chans=4, embed_dim=32, batch=2  => num_patches = 16.
    B, C, H, W = 2, 4, 16, 16
    ph = pw = 4
    E = 32

    key = jax.random.PRNGKey(0)
    kx, kw, kb = jax.random.split(key, 3)
    x = jax.random.normal(kx, (B, C, H, W), dtype=jnp.float32)
    weight = jax.random.normal(kw, (E, C, ph, pw), dtype=jnp.float32) * 0.02
    bias = jax.random.normal(kb, (E,), dtype=jnp.float32) * 0.02

    out = patch_embed_forward(x, weight, bias, (ph, pw))
    out = jax.block_until_ready(out)

    # Reference: plain-JAX f32 conv (NCHW, stride=kernel) -> flatten -> transpose.
    ref = jax.lax.conv_general_dilated(
        x, weight, window_strides=(ph, pw), padding="VALID",
        dimension_numbers=("NCHW", "OIHW", "NCHW"))
    ref = ref + bias[None, :, None, None]
    ref = ref.reshape(B, E, -1).transpose(0, 2, 1)

    num_patches = (H // ph) * (W // pw)
    assert out.shape == (B, num_patches, E), out.shape
    # Tolerance loosened for the bf16 operand stream / bf16 output (f32 accumulate).
    assert jnp.allclose(out.astype(jnp.float32), ref, atol=3e-2, rtol=3e-2), \
        "mismatch vs reference"
    print("KERNEL_OK")
</pallas_src>

<mosaic_0001>
module attributes {stable_mosaic.version = 11 : i64} {
  func.func @_fused_kernel(%arg0: i32, %arg1: memref<1x4x16x16xf32, #tpu.memory_space<vmem>>, %arg2: memref<64x32xbf16, #tpu.memory_space<vmem>>, %arg3: memref<1x32xf32, #tpu.memory_space<vmem>>, %arg4: memref<1x16x32xbf16, #tpu.memory_space<vmem>>) attributes {dimension_semantics = [#tpu.dimension_semantics<parallel>], iteration_bounds = array<i64: 2>, scalar_prefetch = 0 : i64, scratch_operands = 0 : i64, tpu.core_type = #tpu.core_type<tc>, window_params = [{transform_indices = @transform_0, window_bounds = array<i64: 1, 4, 16, 16>}, {pipeline_mode = #tpu.pipeline_mode<synchronous>, transform_indices = @transform_1, window_bounds = array<i64: 64, 32>}, {pipeline_mode = #tpu.pipeline_mode<synchronous>, transform_indices = @transform_2, window_bounds = array<i64: 1, 32>}, {transform_indices = @transform_3, window_bounds = array<i64: 1, 16, 32>}]} {
    %c0 = arith.constant 0 : index
    %c0_0 = arith.constant 0 : index
    %c0_1 = arith.constant 0 : index
    %c0_2 = arith.constant 0 : index
    %0 = vector.load %arg1[%c0, %c0_0, %c0_1, %c0_2] : memref<1x4x16x16xf32, #tpu.memory_space<vmem>>, vector<1x4x16x16xf32>
    %1 = vector.shape_cast %0 : vector<1x4x16x16xf32> to vector<4x16x16xf32>
    %2 = vector.shape_cast %1 : vector<4x16x16xf32> to vector<4x4x4x4x4xf32>
    %3 = tpu.transpose %2, [1, 3, 0, 2, 4] : vector<4x4x4x4x4xf32> -> vector<4x4x4x4x4xf32>
    %4 = vector.shape_cast %3 : vector<4x4x4x4x4xf32> to vector<16x64xf32>
    %5 = arith.truncf %4 : vector<16x64xf32> to vector<16x64xbf16>
    %c0_3 = arith.constant 0 : index
    %c0_4 = arith.constant 0 : index
    %6 = vector.load %arg2[%c0_3, %c0_4] : memref<64x32xbf16, #tpu.memory_space<vmem>>, vector<64x32xbf16>
    %cst = arith.constant dense<0.000000e+00> : vector<16x32xf32>
    %7 = tpu.matmul %5, %6, %cst {dimension_numbers = #tpu.dot_dimension_numbers<[1], [0], [0], [1], [0, 0, 1, 1], [], []>} : vector<16x64xbf16>, vector<64x32xbf16>, vector<16x32xf32> -> vector<16x32xf32>
    %c0_5 = arith.constant 0 : index
    %c0_6 = arith.constant 0 : index
    %8 = vector.load %arg3[%c0_5, %c0_6] : memref<1x32xf32, #tpu.memory_space<vmem>>, vector<1x32xf32>
    %9 = vector.broadcast %8 : vector<1x32xf32> to vector<16x32xf32>
    %10 = arith.addf %7, %9 : vector<16x32xf32>
    %11 = arith.truncf %10 : vector<16x32xf32> to vector<16x32xbf16>
    %c0_7 = arith.constant 0 : index
    %c0_8 = arith.constant 0 : index
    %c0_9 = arith.constant 0 : index
    %12 = vector.load %arg4[%c0_7, %c0_8, %c0_9] : memref<1x16x32xbf16, #tpu.memory_space<vmem>>, vector<1x16x32xbf16>
    %13 = vector.shape_cast %12 : vector<1x16x32xbf16> to vector<16x32xbf16>
    %14 = vector.shape_cast %11 : vector<16x32xbf16> to vector<1x16x32xbf16>
    tpu.vector_store %arg4[%c0_7, %c0_8, %c0_9], %14 {strides = array<i32>} : memref<1x16x32xbf16, #tpu.memory_space<vmem>>, vector<1x16x32xbf16>,
    return
  }
  func.func @transform_0(%arg0: i32) -> (i32, i32, i32, i32) {
    %c0_i32 = arith.constant 0 : i32
    %c0_i32_0 = arith.constant 0 : i32
    %c0_i32_1 = arith.constant 0 : i32
    %c0_i32_2 = arith.constant 0 : i32
    return %arg0, %c0_i32, %c0_i32_0, %c0_i32_1 : i32, i32, i32, i32
  }
  func.func @transform_1(%arg0: i32) -> (i32, i32) {
    %c0_i32 = arith.constant 0 : i32
    %c0_i32_0 = arith.constant 0 : i32
    %c0_i32_1 = arith.constant 0 : i32
    return %c0_i32, %c0_i32_0 : i32, i32
  }
  func.func @transform_2(%arg0: i32) -> (i32, i32) {
    %c0_i32 = arith.constant 0 : i32
    %c0_i32_0 = arith.constant 0 : i32
    %c0_i32_1 = arith.constant 0 : i32
    return %c0_i32, %c0_i32_0 : i32, i32
  }
  func.func @transform_3(%arg0: i32) -> (i32, i32, i32) {
    %c0_i32 = arith.constant 0 : i32
    %c0_i32_0 = arith.constant 0 : i32
    %c0_i32_1 = arith.constant 0 : i32
    return %arg0, %c0_i32, %c0_i32_0 : i32, i32, i32
  }
}

module attributes {stable_mosaic.version = 11 : i64} {
  func.func @_split_kernel(%arg0: i32, %arg1: memref<16x64xbf16, #tpu.memory_space<vmem>>, %arg2: memref<64x32xbf16, #tpu.memory_space<vmem>>, %arg3: memref<1x32xf32, #tpu.memory_space<vmem>>, %arg4: memref<16x32xbf16, #tpu.memory_space<vmem>>) attributes {dimension_semantics = [#tpu.dimension_semantics<parallel>], iteration_bounds = array<i64: 2>, scalar_prefetch = 0 : i64, scratch_operands = 0 : i64, tpu.core_type = #tpu.core_type<tc>, window_params = [{transform_indices = @transform_0, window_bounds = array<i64: 16, 64>}, {pipeline_mode = #tpu.pipeline_mode<synchronous>, transform_indices = @transform_1, window_bounds = array<i64: 64, 32>}, {pipeline_mode = #tpu.pipeline_mode<synchronous>, transform_indices = @transform_2, window_bounds = array<i64: 1, 32>}, {transform_indices = @transform_3, window_bounds = array<i64: 16, 32>}]} {
    %c0 = arith.constant 0 : index
    %c0_0 = arith.constant 0 : index
    %0 = vector.load %arg1[%c0, %c0_0] : memref<16x64xbf16, #tpu.memory_space<vmem>>, vector<16x64xbf16>
    %c0_1 = arith.constant 0 : index
    %c0_2 = arith.constant 0 : index
    %1 = vector.load %arg2[%c0_1, %c0_2] : memref<64x32xbf16, #tpu.memory_space<vmem>>, vector<64x32xbf16>
    %cst = arith.constant dense<0.000000e+00> : vector<16x32xf32>
    %2 = tpu.matmul %0, %1, %cst {dimension_numbers = #tpu.dot_dimension_numbers<[1], [0], [0], [1], [0, 0, 1, 1], [], []>} : vector<16x64xbf16>, vector<64x32xbf16>, vector<16x32xf32> -> vector<16x32xf32>
    %c0_3 = arith.constant 0 : index
    %c0_4 = arith.constant 0 : index
    %3 = vector.load %arg3[%c0_3, %c0_4] : memref<1x32xf32, #tpu.memory_space<vmem>>, vector<1x32xf32>
    %4 = vector.broadcast %3 : vector<1x32xf32> to vector<16x32xf32>
    %5 = arith.addf %2, %4 : vector<16x32xf32>
    %6 = arith.truncf %5 : vector<16x32xf32> to vector<16x32xbf16>
    %c0_5 = arith.constant 0 : index
    %c0_6 = arith.constant 0 : index
    %7 = vector.load %arg4[%c0_5, %c0_6] : memref<16x32xbf16, #tpu.memory_space<vmem>>, vector<16x32xbf16>
    tpu.vector_store %arg4[%c0_5, %c0_6], %6 {strides = array<i32>} : memref<16x32xbf16, #tpu.memory_space<vmem>>, vector<16x32xbf16>,
    return
  }
  func.func @transform_0(%arg0: i32) -> (i32, i32) {
    %c0_i32 = arith.constant 0 : i32
    %c0_i32_0 = arith.constant 0 : i32
    return %arg0, %c0_i32 : i32, i32
  }
  func.func @transform_1(%arg0: i32) -> (i32, i32) {
    %c0_i32 = arith.constant 0 : i32
    %c0_i32_0 = arith.constant 0 : i32
    %c0_i32_1 = arith.constant 0 : i32
    return %c0_i32, %c0_i32_0 : i32, i32
  }
  func.func @transform_2(%arg0: i32) -> (i32, i32) {
    %c0_i32 = arith.constant 0 : i32
    %c0_i32_0 = arith.constant 0 : i32
    %c0_i32_1 = arith.constant 0 : i32
    return %c0_i32, %c0_i32_0 : i32, i32
  }
  func.func @transform_3(%arg0: i32) -> (i32, i32) {
    %c0_i32 = arith.constant 0 : i32
    %c0_i32_0 = arith.constant 0 : i32
    return %arg0, %c0_i32 : i32, i32
  }
}

</mosaic_0001>

<bundles_post_ra>
// kernel: tpu_custom_call.1
= control target key start
LH: loop header
LB: loop body
LE: loop exit
PB: predicated region body
PF: predicated region fallthrough
CT: control target
= control target key end

     0   :  { %8 = vsyncpa [#allocation3], 0  ;;  %s643_s0 = inlined_call_operand.vmem [shape: bf16[32,64], index: 0, kind: input, shape index: {}]   ;;  %s644_s1 = inlined_call_operand.vmem [shape: bf16[64,32], index: 1, kind: input, shape index: {}]   ;;  %s645_s2 = inlined_call_operand.vmem [shape: f32[1,32], index: 2, kind: input, shape index: {}]   ;;  %s646_s3 = inlined_call_operand.hbm [shape: bf16[32,32], index: 3, kind: output, shape index: {}]  }
   0x1   :  { %10 = vsyncpa [#allocation3 + $0x1], 0  ;;  %s527_s12 = smov 0   ;;  %s529_s13 = smov 0  }
   0x2   :  { %s531_s14 = smov 0   ;;  %s533_s15 = smov 0  }
   0x3 LB: > { %s548_s16 = sadd.s32 4294967295, %s500_s15   ;;  %s351_s17 = sadd.s32 4294967294, %s500_s15   ;;  %s500_s15 = sphi %s533_s15, %s652_s15   ;;  %s496_s14 = sphi %s531_s14, %s651_s14   ;;  %s492_s13 = sphi %s529_s13, %s650_s13   ;;  %s488_s12 = sphi %s527_s12, %s649_s12  }
   0x4   : > { %s552_s18 = sadd.s32 1, %s500_s15   ;;  %s91_s19 = sadd.s32 1, %s496_s14 }
   0x5   : > { %s88_s20 = ssub.s32 %s500_s15, %s552_s18  ;;  %p101_p0 = scmp.ne.s32.totalorder %s496_s14, %s492_s13 }
   0x6   : > { %p89_p1 = scmp.eq.s32.totalorder %s88_s20, 0  ;;  %p102_p2 = scmp.eq.s32.totalorder %s548_s16, 1 }
   0x7   : > { %p107_p3 = scmp.ne.s32.totalorder %s492_s13, %s488_s12  ;;  %p108_p4 = scmp.eq.s32.totalorder %s351_s17, 1 }
   0x8   : > { %s563_s21 = scalar_select %p89_p1, %s496_s14, %s91_s19  }
   0x9   : > { %p565_p5 = por %p102_p2, %p101_p0  ;;  %p569_p6 = por %p108_p4, %p107_p3 }
   0xa   : > { %p354_p7 = scmp.ge.s32.totalorder %s500_s15, 1  ;;  %p141_p8 = scmp.lt.s32.totalorder %s500_s15, 3 }
   0xc   : > { %p142_p9 = pnand %p354_p7, %p141_p8 }
   0xd   : > { %s356_s28 = sshll.u32 (!%p142_p9), %s548_s16, 1  ;;  %s162_s10 = sand.u32 (!%p142_p9), 1, %s492_s13  }
   0xe   : > { %145 = sbr.rel (%p142_p9) target bundleno = 251 (0xfb), region = 32  ;;  %p166_p10 = scmp.lt.s32.totalorder (!%p142_p9), %s356_s28, 3 }
   0xf   : > { %s355_s19 = sshll.u32 (!%p142_p9), %s162_s10, 3  ;;  %s374_s25 = sshll.u32 (!%p142_p9), %s548_s16, 7 }
  0x10   : > { %s164_s20 = scalar_lea.vmem (!%p142_p9), [#allocation2], %s355_s19  ;;  %s603_s29 = scalar_lea.sflag (!%p142_p9), [#allocation3], %s162_s10 }
  0x11   : > { %s289_s24 = sshll.u32 (!%p142_p9), %s164_s20, 4  ;;  %s504_s16 = smov (!%p142_p9), [#allocation2]   ;;  %s596_s24 = int_to_ptr.vmem [resolvable:$true] %s289_s24 }
  0x12   : > { %s440_s30 = scalar_lea.vmem (!%p142_p9), %s596_s24, 128 }
  0x13   : > { %v435_v0 = vld [vmem:[%s644_s1 + $0x18] sm:$0xff]   ;;  %v502_v1 = vmov 0.0   ;;  %v436_v2 = vld [vmem:[%s644_s1 + $0x10] sm:$0xff]   ;;  %vm503_vm0 = vmmov 0   ;;  %s654_s28 = smov (!%p166_p10, %s356_s28), 3  ;;  %v437_v3 = vld [vmem:[%s644_s1 + $0x8] sm:$0xff]   ;;  %p441_p11 = scmp.ne.s32.totalorder %s596_s24, %s440_s30 }
  0x14   : > { %380 = vmatprep.subr.bf16.mxu0 %v502_v1  ;;  %388 = vmatprep.mubr.msk.bf16.mxu0 %vm503_vm0, %v502_v1  ;;  %s357_s4 = sshll.u32 %s654_s28, 2  ;;  %v438_v4 = vld [vmem:[%s644_s1] sm:$0xff]   ;;  %vm219_vm1 = vcmask 523264   ;;  %vm272_vm2 = vcmask 257024   ;;  %s601_s28 = scalar_lea.hbm %s646_s3, %s374_s25 }
  0x15   : > { %381 = vmatpush3.bf16.msra.mxu0 %v435_v0  ;;  %s169_s7 = scalar_lea.vmem %s643_s0, %s357_s4  ;;  %v358_v6 = vld [vmem:[%s645_s2] ss:$0 sm:$0xff]  ;;  %p442_p12 = pnand %p441_p11, %p565_p5 }
  0x16   : > { %382 = vmatprep.subr.bf16.mxu0 %v502_v1  ;;  %v439_v5 = vld [vmem:[%s169_s7] sm:$0xff]   ;;  %s444_s4 = sshll.u32 %s504_s16, 4  ;;  %s445_s4 = int_to_ptr.vmem [resolvable:$false] %s444_s4 }
  0x17   : > { %p443_p13 = pneg %p442_p12  ;;  %s446_s5 = scalar_lea.vmem %s445_s4, 256 }
  0x18   : > { %p447_p0 = scmp.lt.s32.totalorder %s596_s24, %s445_s4  ;;  %p448_p1 = scmp.lt.s32.totalorder %s446_s5, %s440_s30 }
  0x19   : > { %383 = vmatpush3.bf16.msra.mxu0 %v436_v2 }
  0x1a   : > { %384 = vmatprep.subr.bf16.mxu0 %v502_v1  ;;  %p449_p2 = por %p448_p1, %p447_p0 }
  0x1c   : > { %p450_p3 = pnand %p449_p2, %p443_p13 }
  0x1d   : > { %385 = vmatpush3.bf16.msra.mxu0 %v437_v3 }
  0x1e   : > { %386 = vmatprep.subr.bf16.mxu0 %v502_v1 }
  0x21   : > { %387 = vmatpush3.bf16.msra.mxu0 %v438_v4 }
  0x24   : > { %389 = vmatmul.mubr.msk.bf16.vlgmr.msra.gmra.mxu0 %vm219_vm1, %v439_v5 }
  0xe4   : > { %v257_v7 = vpop.f32.mrf.mxu0 }
  0xe5   : > { %v258_v8 = vadd.f32 %v358_v6, %v257_v7 }
  0xe6   : > { %v390_v9 = vpop.f32.mrf.mxu0 }
  0xe7   : > { %v372_v10 = vpack.c.bf16 %v258_v8, %v258_v8 }
  0xe8   : > { %v260_v11 = vpop.f32.mrf.mxu0 }
  0xe9   : > { %273 = vst.msk [vmem:[%s164_s20] sm:$0xf] %vm272_vm2, %v372_v10  ;;  %v261_v12 = vadd.f32 %v358_v6, %v260_v11 }
  0xea   : > { %v391_v13 = vpop.f32.mrf.mxu0 }
  0xeb   : > { %v373_v14 = vpack.c.bf16 %v261_v12, %v261_v12 }
  0xed   : > { %274 = vst.msk [vmem:[%s164_s20 + $0x4] sm:$0xf] %vm272_vm2, %v373_v14 }
  0xee   : > { %453 = shalt.err (!%p450_p3)
}
  0xef   : > { %s454_s6 = scalar_lea.hbm %s601_s28, 128  ;;  %s458_s9 = scalar_lea.hbm %s646_s3, 256 }
  0xf0   : > { %p455_p4 = scmp.ne.s32.totalorder %s601_s28, %s454_s6  ;;  %p459_p9 = scmp.lt.s32.totalorder %s601_s28, %s646_s3 }
  0xf1   : > { %p460_p10 = scmp.lt.s32.totalorder %s458_s9, %s454_s6 }
  0xf2   : > { %p456_p7 = pnand %p455_p4, %p565_p5 }
  0xf3   : > { %p461_p11 = por %p460_p10, %p459_p9 }
  0xf4   : > { %p457_p8 = pneg %p456_p7 }
  0xf6   : > { %p462_p12 = pnand %p461_p11, %p457_p8 }
  0xf8   : > { %465 = shalt.err (!%p462_p12)
}
  0xf9   : > { %s505_s17 = smov 64   ;;  %s506_s19 = smov 4  }
  0xfa   : > { %392 = dma.vmem_to_hbm [thread:$0]  (%p565_p5), %s596_s24, 128, %s601_s28, %s603_s29, %s505_s17, %s505_s17, %s506_s19  }
  0xfb PF: > { %p398_p13 = scmp.ge.s32.totalorder %s500_s15, 2  ;;  %s304_s20 = sand.u32 1, %s488_s12  }
  0xfc   : > { %s305_s25 = scalar_lea.sflag [#allocation3], %s304_s20 }
  0xfd   : > { %p395_p0 = pnand %p398_p13, %p569_p6 }
  0xff   : > { %p396_p1 = pneg %p395_p0 }
 0x101   : > { %483 = dma.done.wait (%p396_p1), %s305_s25, 128  }
 0x102   : > { %485 = vsyncadd (%p396_p1), %s305_s25, 4294967168  ;;  %p13_p2 = scmp.ge.s32.totalorder %s552_s18, 4   ;;  %s649_s12 = smov %s492_s13 }
 0x103   : > { %s650_s13 = smov %s496_s14  ;;  %s651_s14 = smov %s563_s21 }
 0x104   : > { %s652_s15 = smov %s552_s18  ;;  %15 = sbr.rel (!%p13_p2) target bundleno = 3 (0x3), region = 67 }
 0x109   :  { %310 = vsyncpa [#allocation3], 1 }
 0x10a   :  { %312 = vsyncpa [#allocation3 + $0x1], 1 }

</bundles_post_ra>
